<compile_context>
chip_gen: v7x
topology: tpu7x:2x2x1
jax: 0.10.0
libtpu: 0.0.40
codegen_flags: <defaults>
</compile_context>

<pallas_src>
import functools

import jax
import jax.numpy as jnp
from jax.experimental import pallas as pl
from jax.experimental.pallas import tpu as pltpu


def _pick_chunk(f):
    """Lane-chunk width for the streaming reduction (must divide f)."""
    for c in (512, 1024, 256, 128):
        if f % c == 0:
            return c
    return f  # unusual feature width: fall back to a single whole-row chunk


def _cpc_loss_kernel(p_ref, y_ref, o_ref, *, chunk, inv_scale):
    # p_ref / y_ref: (TB, F) blocks (F = S*E), o_ref: (TB, 1)
    tb, f = p_ref.shape
    nchunks = f // chunk

    def body(c, acc):
        off = c * chunk
        if chunk % 128 == 0:
            off = pl.multiple_of(off, 128)
        p = p_ref[:, pl.ds(off, chunk)]
        y = y_ref[:, pl.ds(off, chunk)]
        # Per-chunk cast (bounded temps); f32 accumulate regardless of dtype.
        return acc + p.astype(jnp.float32) * y.astype(jnp.float32)

    acc = jax.lax.fori_loop(
        0, nchunks, body,
        jnp.zeros((tb, chunk), jnp.float32),
        unroll=(nchunks <= 8))

    # One cross-lane reduce + one constant multiply (folds both means).
    m = jnp.sum(acc, axis=-1, keepdims=True) * inv_scale      # (TB, 1) f32

    # Numerically stable sigmoid in f32 (exp argument always non-positive).
    pos = m >= 0.0
    em = jnp.exp(jnp.where(pos, -m, m))
    probs = jnp.where(pos, 1.0 / (1.0 + em), em / (1.0 + em))
    o_ref[...] = probs.astype(o_ref.dtype)


def cpc_loss(preds, y_encoded, *, block_b=None, vmem_budget_bytes=8 << 20):
    """preds, y_encoded: (..., S, E) with identical shapes -> (..., 1)."""
    assert preds.shape == y_encoded.shape, (preds.shape, y_encoded.shape)
    assert preds.ndim >= 2, "expected (..., seq, embed) inputs"
    lead = preds.shape[:-2]
    S, E = preds.shape[-2], preds.shape[-1]
    B = 1
    for d in lead:
        B *= d
    F = S * E

    # Lane-dense (B, F) view; contiguous reshape — no data movement.
    p2 = preds.reshape(B, F)
    y2 = y_encoded.reshape(B, F)

    itemsize = jnp.dtype(preds.dtype).itemsize
    row_bytes = F * itemsize          # one input row in HBM
    chunk = _pick_chunk(F)

    pad = 0
    if block_b is None:
        # 2 inputs x 2 pipeline buffers per batch row must fit the budget.
        cap = max(8, (vmem_budget_bytes // (4 * row_bytes)) // 8 * 8)
        if B <= cap:
            block_b = B
            # Prefer >= 2 grid steps (pipelining + v7x two-core sharding) as
            # long as each half-tile still carries >= 1 MiB per input.
            half = (B // 2) // 8 * 8
            if half >= 8 and B % half == 0 and half * row_bytes >= (1 << 20):
                block_b = half
        else:
            # Largest multiple-of-8 divisor of B that fits the byte budget.
            block_b = 0
            for d in range(cap, 7, -8):
                if B % d == 0:
                    block_b = d
                    break
            if block_b == 0:
                # No clean divisor: tile at the cap and zero-pad the batch.
                block_b = cap
                pad = (-B) % block_b
    elif B % block_b != 0:
        pad = (-B) % block_b

    if pad:
        p2 = jnp.pad(p2, ((0, pad), (0, 0)))
        y2 = jnp.pad(y2, ((0, pad), (0, 0)))
    Bp = B + pad
    num_blocks = Bp // block_b

    # Explicit scoped-VMEM request for what is actually allocated.
    vmem_bytes = (4 * block_b * row_bytes          # 2 inputs x double buffer
                  + 4 * block_b * chunk            # f32 accumulator carry
                  + 2 * block_b * itemsize)        # (tiny) output buffers
    vmem_limit = max(vmem_bytes + (4 << 20), 16 << 20)

    cost = pl.CostEstimate(
        flops=2 * Bp * F + Bp,                     # mul + accumulate add
        transcendentals=Bp,                        # one exp per output element
        bytes_accessed=2 * Bp * F * itemsize + Bp * itemsize,
    )

    kernel = functools.partial(_cpc_loss_kernel, chunk=chunk,
                               inv_scale=1.0 / float(F))

    out = pl.pallas_call(
        kernel,
        out_shape=jax.ShapeDtypeStruct((Bp, 1), preds.dtype),
        grid_spec=pltpu.PrefetchScalarGridSpec(
            num_scalar_prefetch=0,
            grid=(num_blocks,),
            in_specs=[
                pl.BlockSpec((block_b, F), lambda i: (i, 0)),
                pl.BlockSpec((block_b, F), lambda i: (i, 0)),
            ],
            out_specs=pl.BlockSpec((block_b, 1), lambda i: (i, 0)),
        ),
        compiler_params=pltpu.CompilerParams(
            dimension_semantics=("parallel",),
            vmem_limit_bytes=int(vmem_limit)),
        cost_estimate=cost,
    )(p2, y2)

    if pad:
        out = out[:B]
    return out.reshape(lead + (1,))


if __name__ == "__main__":
    key = jax.random.PRNGKey(0)
    kp, ky = jax.random.split(key, 2)

    B, S, E = 8, 16, 128
    preds = jax.random.normal(kp, (B, S, E), dtype=jnp.float32)
    y_encoded = jax.random.normal(ky, (B, S, E), dtype=jnp.float32)

    out = cpc_loss(preds, y_encoded)
    out = jax.block_until_ready(out)

    # Reference check (pure JAX, mirrors the torch module exactly).
    dot = jnp.mean(y_encoded * preds, axis=-1)
    dot = jnp.mean(dot, axis=-1, keepdims=True)
    ref = jax.nn.sigmoid(dot)

    assert out.shape == (B, 1), out.shape
    assert jnp.allclose(out, ref, atol=1e-5, rtol=1e-5), float(
        jnp.max(jnp.abs(out - ref)))

    print("KERNEL_OK")
</pallas_src>

<mosaic_0001>
module attributes {stable_mosaic.version = 11 : i64} {
  func.func @_cpc_loss_kernel(%arg0: i32, %arg1: memref<8x2048xf32, #tpu.memory_space<vmem>>, %arg2: memref<8x2048xf32, #tpu.memory_space<vmem>>, %arg3: memref<8x1xf32, #tpu.memory_space<vmem>>) attributes {dimension_semantics = [#tpu.dimension_semantics<parallel>], iteration_bounds = array<i64: 1>, scalar_prefetch = 0 : i64, scratch_operands = 0 : i64, tpu.core_type = #tpu.core_type<tc>, window_params = [{transform_indices = @transform_0, window_bounds = array<i64: 8, 2048>}, {transform_indices = @transform_1, window_bounds = array<i64: 8, 2048>}, {transform_indices = @transform_2, window_bounds = array<i64: 8, 1>}]} {
    %cst = arith.constant 0.000000e+00 : f32
    %0 = vector.broadcast %cst : f32 to vector<8x512xf32>
    %c0_i32 = arith.constant 0 : i32
    %c512_i32 = arith.constant 512 : i32
    %1 = arith.muli %c0_i32, %c512_i32 : i32
    %2 = tpu.assume_multiple %1, 128 : i32
    %c0 = arith.constant 0 : index
    %3 = arith.index_cast %2 : i32 to index
    %4 = vector.load %arg1[%c0, %3] : memref<8x2048xf32, #tpu.memory_space<vmem>>, vector<8x512xf32>
    %c0_0 = arith.constant 0 : index
    %5 = arith.index_cast %2 : i32 to index
    %6 = vector.load %arg2[%c0_0, %5] : memref<8x2048xf32, #tpu.memory_space<vmem>>, vector<8x512xf32>
    %7 = arith.mulf %4, %6 : vector<8x512xf32>
    %8 = arith.addf %0, %7 : vector<8x512xf32>
    %c1_i32 = arith.constant 1 : i32
    %c512_i32_1 = arith.constant 512 : i32
    %9 = arith.muli %c1_i32, %c512_i32_1 : i32
    %10 = tpu.assume_multiple %9, 128 : i32
    %c0_2 = arith.constant 0 : index
    %11 = arith.index_cast %10 : i32 to index
    %12 = vector.load %arg1[%c0_2, %11] : memref<8x2048xf32, #tpu.memory_space<vmem>>, vector<8x512xf32>
    %c0_3 = arith.constant 0 : index
    %13 = arith.index_cast %10 : i32 to index
    %14 = vector.load %arg2[%c0_3, %13] : memref<8x2048xf32, #tpu.memory_space<vmem>>, vector<8x512xf32>
    %15 = arith.mulf %12, %14 : vector<8x512xf32>
    %16 = arith.addf %8, %15 : vector<8x512xf32>
    %c2_i32 = arith.constant 2 : i32
    %c512_i32_4 = arith.constant 512 : i32
    %17 = arith.muli %c2_i32, %c512_i32_4 : i32
    %18 = tpu.assume_multiple %17, 128 : i32
    %c0_5 = arith.constant 0 : index
    %19 = arith.index_cast %18 : i32 to index
    %20 = vector.load %arg1[%c0_5, %19] : memref<8x2048xf32, #tpu.memory_space<vmem>>, vector<8x512xf32>
    %c0_6 = arith.constant 0 : index
    %21 = arith.index_cast %18 : i32 to index
    %22 = vector.load %arg2[%c0_6, %21] : memref<8x2048xf32, #tpu.memory_space<vmem>>, vector<8x512xf32>
    %23 = arith.mulf %20, %22 : vector<8x512xf32>
    %24 = arith.addf %16, %23 : vector<8x512xf32>
    %c3_i32 = arith.constant 3 : i32
    %c512_i32_7 = arith.constant 512 : i32
    %25 = arith.muli %c3_i32, %c512_i32_7 : i32
    %26 = tpu.assume_multiple %25, 128 : i32
    %c0_8 = arith.constant 0 : index
    %27 = arith.index_cast %26 : i32 to index
    %28 = vector.load %arg1[%c0_8, %27] : memref<8x2048xf32, #tpu.memory_space<vmem>>, vector<8x512xf32>
    %c0_9 = arith.constant 0 : index
    %29 = arith.index_cast %26 : i32 to index
    %30 = vector.load %arg2[%c0_9, %29] : memref<8x2048xf32, #tpu.memory_space<vmem>>, vector<8x512xf32>
    %31 = arith.mulf %28, %30 : vector<8x512xf32>
    %32 = arith.addf %24, %31 : vector<8x512xf32>
    %c4_i32 = arith.constant 4 : i32
    %cst_10 = arith.constant dense<0.000000e+00> : vector<8xf32>
    %33 = vector.multi_reduction <add>, %32, %cst_10 [1] : vector<8x512xf32> to vector<8xf32>
    %34 = vector.shape_cast %33 : vector<8xf32> to vector<8x1xf32>
    %cst_11 = arith.constant 4.8828125E-4 : f32
    %35 = vector.broadcast %cst_11 : f32 to vector<8x1xf32>
    %36 = arith.mulf %34, %35 : vector<8x1xf32>
    %cst_12 = arith.constant 0.000000e+00 : f32
    %37 = vector.broadcast %cst_12 : f32 to vector<8x1xf32>
    %38 = arith.cmpf oge, %36, %37 : vector<8x1xf32>
    %cst_13 = arith.constant 0.000000e+00 : f32
    %39 = vector.broadcast %cst_13 : f32 to vector<8x1xf32>
    %40 = arith.subf %39, %36 : vector<8x1xf32>
    %41 = arith.select %38, %40, %36 : vector<8x1xi1>, vector<8x1xf32>
    %42 = math.exp %41 : vector<8x1xf32>
    %cst_14 = arith.constant 1.000000e+00 : f32
    %43 = vector.broadcast %cst_14 : f32 to vector<8x1xf32>
    %44 = arith.addf %43, %42 : vector<8x1xf32>
    %cst_15 = arith.constant 1.000000e+00 : f32
    %45 = vector.broadcast %cst_15 : f32 to vector<8x1xf32>
    %46 = arith.divf %45, %44 : vector<8x1xf32>
    %cst_16 = arith.constant 1.000000e+00 : f32
    %47 = vector.broadcast %cst_16 : f32 to vector<8x1xf32>
    %48 = arith.addf %47, %42 : vector<8x1xf32>
    %49 = arith.divf %42, %48 : vector<8x1xf32>
    %50 = arith.select %38, %46, %49 : vector<8x1xi1>, vector<8x1xf32>
    %c0_17 = arith.constant 0 : index
    %c0_18 = arith.constant 0 : index
    %51 = vector.load %arg3[%c0_17, %c0_18] : memref<8x1xf32, #tpu.memory_space<vmem>>, vector<8x1xf32>
    tpu.vector_store %arg3[%c0_17, %c0_18], %50 {strides = array<i32>} : memref<8x1xf32, #tpu.memory_space<vmem>>, vector<8x1xf32>,
    return
  }
  func.func @transform_0(%arg0: i32) -> (i32, i32) {
    %c0_i32 = arith.constant 0 : i32
    %c0_i32_0 = arith.constant 0 : i32
    return %arg0, %c0_i32 : i32, i32
  }
  func.func @transform_1(%arg0: i32) -> (i32, i32) {
    %c0_i32 = arith.constant 0 : i32
    %c0_i32_0 = arith.constant 0 : i32
    return %arg0, %c0_i32 : i32, i32
  }
  func.func @transform_2(%arg0: i32) -> (i32, i32) {
    %c0_i32 = arith.constant 0 : i32
    %c0_i32_0 = arith.constant 0 : i32
    return %arg0, %c0_i32 : i32, i32
  }
}

</mosaic_0001>

<bundles_post_ra>
// kernel: tpu_custom_call.1
= control target key start
LH: loop header
LB: loop body
LE: loop exit
PB: predicated region body
PF: predicated region fallthrough
CT: control target
= control target key end

     0   :  { %7 = vsyncpa [#allocation3], 0  ;;  %s227_s0 = inlined_call_operand.hbm [shape: f32[8,2048], index: 0, kind: input, shape index: {}]   ;;  %s228_s1 = inlined_call_operand.hbm [shape: f32[8,2048], index: 1, kind: input, shape index: {}]   ;;  %s229_s2 = inlined_call_operand.vmem [shape: f32[8,1], index: 2, kind: output, shape index: {}]  }
   0x1   :  { %8 = vsyncpa [#allocation5], 0  ;;  %s183_s9 = smov [#allocation2]   ;;  %s184_s11 = smov [#allocation4]  }
   0x2   :  { %s15_s10 = sshll.u32 %s183_s9, 4  ;;  %s25_s12 = sshll.u32 %s184_s11, 4  ;;  %s16_s10 = int_to_ptr.vmem [resolvable:$true] %s15_s10  ;;  %s26_s12 = int_to_ptr.vmem [resolvable:$true] %s25_s12 }
   0x3   :  { %s135_s15 = scalar_lea.hbm %s227_s0, 2048 }
   0x4   :  { %p136_p0 = scmp.ne.s32.totalorder %s227_s0, %s135_s15  ;;  %p139_p1 = scmp.lt.u32.totalorder %s135_s15, %s227_s0 }
   0x6   :  { %p141_p2 = pnand %p139_p1, %p136_p0 }
   0x8   :  { %144 = shalt.err (!%p141_p2)
}
   0x9   :  { %s145_s20 = scalar_lea.vmem %s16_s10, 2048  ;;  %p150_p4 = scmp.lt.s32.totalorder %s16_s10, %s16_s10 }
   0xa   :  { %p146_p3 = scmp.ne.s32.totalorder %s16_s10, %s145_s20  ;;  %p151_p5 = scmp.lt.s32.totalorder %s145_s20, %s145_s20 }
   0xc   :  { %p152_p6 = por %p151_p5, %p150_p4 }
   0xe   :  { %p153_p7 = pnand %p152_p6, %p146_p3 }
  0x10   :  { %156 = shalt.err (!%p153_p7)
}
  0x11   :  { %18 = dma.hbm_to_vmem [thread:$0]  %s227_s0, 2048, %s16_s10, [#allocation3]  }
  0x12   :  { %s157_s25 = scalar_lea.hbm %s228_s1, 2048 }
  0x13   :  { %p158_p8 = scmp.ne.s32.totalorder %s228_s1, %s157_s25  ;;  %p161_p9 = scmp.lt.u32.totalorder %s157_s25, %s228_s1 }
  0x15   :  { %p163_p10 = pnand %p161_p9, %p158_p8 }
  0x17   :  { %166 = shalt.err (!%p163_p10)
}
  0x18   :  { %s167_s30 = scalar_lea.vmem %s26_s12, 2048  ;;  %p172_p12 = scmp.lt.s32.totalorder %s26_s12, %s26_s12 }
  0x19   :  { %p168_p11 = scmp.ne.s32.totalorder %s26_s12, %s167_s30  ;;  %p173_p13 = scmp.lt.s32.totalorder %s167_s30, %s167_s30 }
  0x1b   :  { %p174_p0 = por %p173_p13, %p172_p12 }
  0x1d   :  { %p175_p1 = pnand %p174_p0, %p168_p11 }
  0x1f   :  { %178 = shalt.err (!%p175_p1)
}
  0x20   :  { %28 = dma.hbm_to_vmem [thread:$0]  %s228_s1, 2048, %s26_s12, [#allocation5]  }
  0x21   :  { %179 = dma.done.wait [#allocation3], 2048  }
  0x22   :  { %180 = vsyncadd [#allocation3], 4294965248 }
  0x23   :  { %181 = dma.done.wait [#allocation5], 2048  }
  0x24   :  { %182 = vsyncadd [#allocation5], 4294965248  ;;  %v35_v0 = vld [vmem:[#allocation2] sm:$0xff]  ;;  %v36_v1 = vld [vmem:[#allocation2 + $0x8] sm:$0xff]  ;;  %vm121_vm1 = vcmask 7168  }
  0x25   :  { %v37_v2 = vld [vmem:[#allocation2 + $0x10] sm:$0xff]  ;;  %v38_v3 = vld [vmem:[#allocation2 + $0x18] sm:$0xff]  ;;  %v39_v4 = vld [vmem:[#allocation4] sm:$0xff] }
  0x26   :  { %v40_v5 = vld [vmem:[#allocation4 + $0x8] sm:$0xff]  ;;  %v41_v6 = vld [vmem:[#allocation4 + $0x10] sm:$0xff]  ;;  %v42_v7 = vld [vmem:[#allocation4 + $0x18] sm:$0xff]  ;;  %v43_v9 = vmul.f32 %v39_v4, %v35_v0 }
  0x27   :  { %v52_v8 = vld [vmem:[#allocation2 + $0x20] sm:$0xff]  ;;  %v44_v10 = vmul.f32 %v40_v5, %v36_v1  ;;  %v45_v11 = vmul.f32 %v41_v6, %v37_v2  ;;  %v53_v12 = vld [vmem:[#allocation2 + $0x28] sm:$0xff]  ;;  %v54_v13 = vld [vmem:[#allocation2 + $0x30] sm:$0xff]  ;;  %v46_v15 = vmul.f32 %v42_v7, %v38_v3 }
  0x28   :  { %v55_v14 = vld [vmem:[#allocation2 + $0x38] sm:$0xff]  ;;  %v57_v16 = vld [vmem:[#allocation4 + $0x20] sm:$0xff]  ;;  %v58_v17 = vld [vmem:[#allocation4 + $0x28] sm:$0xff] }
  0x29   :  { %v59_v18 = vld [vmem:[#allocation4 + $0x30] sm:$0xff]  ;;  %v60_v19 = vld [vmem:[#allocation4 + $0x38] sm:$0xff]  ;;  %v61_v20 = vmul.f32 %v57_v16, %v52_v8  ;;  %v62_v21 = vmul.f32 %v58_v17, %v53_v12  ;;  %v70_v23 = vld [vmem:[#allocation2 + $0x40] sm:$0xff] }
  0x2a   :  { %v63_v22 = vmul.f32 %v59_v18, %v54_v13  ;;  %v71_v24 = vld [vmem:[#allocation2 + $0x48] sm:$0xff]  ;;  %v64_v25 = vmul.f32 %v60_v19, %v55_v14  ;;  %v72_v26 = vld [vmem:[#allocation2 + $0x50] sm:$0xff]  ;;  %v73_v27 = vld [vmem:[#allocation2 + $0x58] sm:$0xff] }
  0x2b   :  { %v75_v28 = vld [vmem:[#allocation4 + $0x40] sm:$0xff]  ;;  %v65_v29 = vadd.f32 %v61_v20, %v43_v9  ;;  %v66_v30 = vadd.f32 %v62_v21, %v44_v10  ;;  %v76_v32 = vld [vmem:[#allocation4 + $0x48] sm:$0xff]  ;;  %v77_v33 = vld [vmem:[#allocation4 + $0x50] sm:$0xff] }
  0x2c   :  { %v67_v31 = vadd.f32 %v63_v22, %v45_v11  ;;  %v78_v34 = vld [vmem:[#allocation4 + $0x58] sm:$0xff]  ;;  %v79_v35 = vmul.f32 %v75_v28, %v70_v23  ;;  %v68_v36 = vadd.f32 %v64_v25, %v46_v15  ;;  %v80_v37 = vmul.f32 %v76_v32, %v71_v24  ;;  %v88_v40 = vld [vmem:[#allocation2 + $0x60] sm:$0xff]  ;;  %v89_v41 = vld [vmem:[#allocation2 + $0x68] sm:$0xff] }
  0x2d   :  { %v81_v38 = vmul.f32 %v77_v33, %v72_v26  ;;  %v82_v39 = vmul.f32 %v78_v34, %v73_v27  ;;  %v90_v42 = vld [vmem:[#allocation2 + $0x70] sm:$0xff]  ;;  %v91_v44 = vld [vmem:[#allocation2 + $0x78] sm:$0xff]  ;;  %v93_v45 = vld [vmem:[#allocation4 + $0x60] sm:$0xff] }
  0x2e   :  { %v83_v43 = vadd.f32 %v79_v35, %v65_v29  ;;  %v94_v46 = vld [vmem:[#allocation4 + $0x68] sm:$0xff]  ;;  %v84_v47 = vadd.f32 %v80_v37, %v66_v30  ;;  %v95_v49 = vld [vmem:[#allocation4 + $0x70] sm:$0xff]  ;;  %v96_v50 = vld [vmem:[#allocation4 + $0x78] sm:$0xff]  ;;  %v97_v51 = vmul.f32 %v93_v45, %v88_v40 }
  0x2f   :  { %v85_v48 = vadd.f32 %v81_v38, %v67_v31  ;;  %v86_v52 = vadd.f32 %v82_v39, %v68_v36  ;;  %v98_v53 = vmul.f32 %v94_v46, %v89_v41  ;;  %v99_v54 = vmul.f32 %v95_v49, %v90_v42 }
  0x30   :  { %v100_v55 = vmul.f32 %v96_v50, %v91_v44  ;;  %v101_v56 = vadd.f32 %v97_v51, %v83_v43 }
  0x31   :  { %v102_v57 = vadd.f32 %v98_v53, %v84_v47  ;;  %v103_v58 = vadd.f32 %v99_v54, %v85_v48 }
  0x32   :  { %v104_v59 = vadd.f32 %v100_v55, %v86_v52 }
  0x33   :  { %v105_v60 = vadd.f32 %v102_v57, %v101_v56 }
  0x35   :  { %v106_v61 = vadd.f32 %v105_v60, %v103_v58 }
  0x37   :  { %v107_v62 = vadd.f32 %v106_v61, %v104_v59 }
  0x39   :  { %108 = vadd.xlane.f32.xlu0 %v107_v62 }
  0xc6   :  { %v109_v63 = vpop.xlane.xlu0 %108 }
  0xc7   :  { %v110_v0 = vmul.f32 0.00048828125, %v109_v63 }
  0xc9   :  { %vm111_vm0 = vcmp.ge.f32.partialorder %v110_v0, 0.0  ;;  %v112_v1 = vsub.f32 0.0, %v110_v0 }
  0xcb   :  { %v113_v2 = vsel %vm111_vm0, %v112_v1, %v110_v0 }
  0xcc   :  { %v114_v3 = vmul.f32 1.442695, %v113_v2 }
  0xce   :  { %131 = vpow2.f32 %v114_v3 }
  0xd8   :  { %v132_v4 = vpop.eup %131 }
  0xd9   :  { %v116_v5 = vadd.f32 1.0, %v132_v4 }
  0xdb   :  { %133 = vrcp.f32 %v116_v5 }
  0xe5   :  { %v134_v6 = vpop.eup %133 }
  0xe6   :  { %v119_v7 = vmul.f32 %v134_v6, %v132_v4 }
  0xe8   :  { %v120_v8 = vsel %vm111_vm0, %v134_v6, %v119_v7 }
  0xe9   :  { %122 = vst.msk [vmem:[%s229_s2] sm:$0xff] %vm121_vm1, %v120_v8 }
  0xea   :  { %127 = vsyncpa [#allocation3], 1 }
  0xeb   :  { %128 = vsyncpa [#allocation5], 1 }

</bundles_post_ra>
